<compile_context>
chip_gen: v5e
topology: v5e:2x2
jax: 0.10.0
libtpu: 0.0.40
codegen_flags: <defaults>
</compile_context>

<pallas_src>
import functools

import jax
import jax.numpy as jnp
from jax import lax
from jax.experimental import pallas as pl
from jax.experimental.pallas import tpu as pltpu

LEVEL = 2
RES_SCALE = 1.0
CHANNEL = 16          # module default is 64; scaled down for the demo
REDUCTION = 4
KSIZE = 3
SOFTMAX_SCALE = 10.0
ESCAPE_NAN = 1e-4
PRELU_ALPHA = 0.25    # nn.PReLU() init value

_VMEM_LIMIT = 64 * 1024 * 1024   # <= physical VMEM on v5e/v6e/v7x


def _choose_tile(n, target, align=8):
    """Largest divisor of n that is <= target and a multiple of `align`."""
    if n <= target:
        return n
    t = (target // align) * align
    while t >= align:
        if n % t == 0:
            return t
        t -= align
    return n


# ---------------------------------------------------------------------------
# Kernel 1: fused 1x1 convs + PReLU (BasicBlock(conv, Cin, Cout, 1))
# Several BasicBlocks sharing the same input are evaluated as one matmul with
# their output channels stacked along the lane axis.
# ---------------------------------------------------------------------------
def _pw_conv_prelu_kernel(x_ref, w_ref, b_ref, o_ref, *, alpha):
    # x: (TM, Cin)  w: (Cin, Cout)  b: (1, Cout)
    y = jnp.dot(x_ref[...], w_ref[...], preferred_element_type=jnp.float32)
    y = y + b_ref[...]
    o_ref[...] = jnp.where(y >= 0.0, y, alpha * y)


def pointwise_conv_prelu(x2d, w, b, alpha=PRELU_ALPHA, row_tile=2048):
    """x2d: (N, Cin), w: (Cin, Cout), b: (Cout,) -> (N, Cout) float32."""
    N, Cin = x2d.shape
    Cout = w.shape[1]
    tm = min(N, row_tile)
    grid_m = pl.cdiv(N, tm)          # ragged last tile handled by Pallas; no jnp.pad copy
    return pl.pallas_call(
        functools.partial(_pw_conv_prelu_kernel, alpha=alpha),
        grid=(grid_m,),
        in_specs=[
            pl.BlockSpec((tm, Cin), lambda i: (i, 0)),
            pl.BlockSpec((Cin, Cout), lambda i: (0, 0)),
            pl.BlockSpec((1, Cout), lambda i: (0, 0)),
        ],
        out_specs=pl.BlockSpec((tm, Cout), lambda i: (i, 0)),
        out_shape=jax.ShapeDtypeStruct((N, Cout), jnp.float32),
        compiler_params=pltpu.CompilerParams(dimension_semantics=("parallel",)),
    )(x2d, w, b.reshape(1, Cout))


# ---------------------------------------------------------------------------
# Kernel 2: in-kernel 3x3 'same' patch extraction (+ optional key prenorm)
# feat (HW, Cc) f32  ->  patches (HW, 9*Cc) bf16, tap-major lane order.
# Shifts are pltpu.roll on the flat HW axis (XLU); boundary masks hoisted.
# ---------------------------------------------------------------------------
def _patchify_kernel(feat_ref, o_ref, *, H, W, normalize, scale):
    HW = H * W
    feat = feat_ref[...]                                     # (HW, Cc) f32
    idx = lax.broadcasted_iota(jnp.int32, (HW, 1), 0)
    row = idx // W
    col = idx % W
    # source position = p + dy*W + dx ; valid iff (row+dy) in [0,H), (col+dx) in [0,W)
    row_ok = {-1: row >= 1, 0: None, 1: row <= H - 2}
    col_ok = {-1: col >= 1, 0: None, 1: col <= W - 2}

    taps = []
    for i in range(KSIZE):
        for j in range(KSIZE):
            dy, dx = i - 1, j - 1
            s = dy * W + dx
            a = pltpu.roll(feat, shift=(-s) % HW, axis=0) if s != 0 else feat
            mask = row_ok[dy]
            cmask = col_ok[dx]
            if cmask is not None:
                mask = cmask if mask is None else jnp.logical_and(mask, cmask)
            if mask is not None:
                a = jnp.where(mask, a, 0.0)
            taps.append(a)
    p = jnp.concatenate(taps, axis=-1)                       # (HW, 9*Cc)

    if normalize:                                            # per-patch L2 norm, clamp, scale
        ssq = jnp.sum(p * p, axis=-1, keepdims=True)
        inv = jnp.minimum(lax.rsqrt(ssq), 1.0 / ESCAPE_NAN)  # == 1 / max(||p||, eps)
        p = p * (inv * scale)
    o_ref[...] = p.astype(o_ref.dtype)


def patchify(feat, H, W, normalize=False, scale=1.0, out_dtype=jnp.bfloat16):
    """feat: (B, HW, Cc) f32 -> (B, HW, 9*Cc) bf16 patches (tap-major)."""
    B, HW, Cc = feat.shape
    return pl.pallas_call(
        functools.partial(_patchify_kernel, H=H, W=W, normalize=normalize, scale=scale),
        grid=(B,),
        in_specs=[pl.BlockSpec((None, HW, Cc), lambda b: (b, 0, 0))],
        out_specs=pl.BlockSpec((None, HW, 9 * Cc), lambda b: (b, 0, 0)),
        out_shape=jax.ShapeDtypeStruct((B, HW, 9 * Cc), out_dtype),
        compiler_params=pltpu.CompilerParams(
            dimension_semantics=("parallel",), vmem_limit_bytes=_VMEM_LIMIT),
    )(feat)


# ---------------------------------------------------------------------------
# Kernel 3: flash-tiled pyramid patch attention
# grid (B, HW-tiles, L-tiles); online softmax over the L axis; outputs the
# per-position fused value patches (HW, 9*C) (softmax-weighted sum of the raw
# 3x3 value patches), folded by kernel 4.
# ---------------------------------------------------------------------------
def _flash_attn_kernel(q_ref, wn_ref, raw_ref, fused_ref, m_sc, l_sc, acc_sc):
    li = pl.program_id(2)

    @pl.when(li == 0)
    def _():
        m_sc[...] = jnp.full(m_sc.shape, -jnp.inf, jnp.float32)
        l_sc[...] = jnp.zeros(l_sc.shape, jnp.float32)
        acc_sc[...] = jnp.zeros(acc_sc.shape, jnp.float32)

    # scores: bf16 operands, f32 MXU accumulation; softmax scale is already
    # folded into the pre-normalized keys wn.
    s = lax.dot_general(q_ref[...], wn_ref[...], (((1,), (1,)), ((), ())),
                        preferred_element_type=jnp.float32)          # (TQ, TL)

    m_prev = m_sc[...]
    m_new = jnp.maximum(m_prev, jnp.max(s, axis=-1, keepdims=True))
    alpha = jnp.exp(m_prev - m_new)
    p = jnp.exp(s - m_new)
    l_sc[...] = alpha * l_sc[...] + jnp.sum(p, axis=-1, keepdims=True)
    acc_sc[...] = alpha * acc_sc[...] + jnp.dot(
        p.astype(jnp.bfloat16), raw_ref[...], preferred_element_type=jnp.float32)
    m_sc[...] = m_new

    @pl.when(li == pl.num_programs(2) - 1)
    def _():
        # exact divide (EUP): approx reciprocal compounds with bf16 probs.
        fused_ref[...] = acc_sc[...] / l_sc[...]


def _flash_attention(q, wn, raw, *, q_tile, l_tile):
    """q: (B,HW,K) bf16, wn: (B,L,K) bf16 prenormalized, raw: (B,L,9C) bf16."""
    B, HW, K = q.shape
    L = wn.shape[1]
    nine_c = raw.shape[2]
    tq = _choose_tile(HW, q_tile)
    tl = _choose_tile(L, l_tile)
    grid = (B, HW // tq, L // tl)
    # TODO(synk): on v7x also try pltpu.CORE_PARALLEL on the (B, HW-tile) axes
    #             to shard across the 2 TensorCores.
    return pl.pallas_call(
        _flash_attn_kernel,
        grid=grid,
        in_specs=[
            pl.BlockSpec((None, tq, K), lambda b, qi, li: (b, qi, 0)),
            pl.BlockSpec((None, tl, K), lambda b, qi, li: (b, li, 0)),
            pl.BlockSpec((None, tl, nine_c), lambda b, qi, li: (b, li, 0),
                         pipeline_mode=pl.Buffered(3)),
        ],
        out_specs=pl.BlockSpec((None, tq, nine_c), lambda b, qi, li: (b, qi, 0)),
        out_shape=jax.ShapeDtypeStruct((B, HW, nine_c), jnp.float32),
        scratch_shapes=[
            pltpu.VMEM((tq, 1), jnp.float32),        # running max m
            pltpu.VMEM((tq, 1), jnp.float32),        # running denom l
            pltpu.VMEM((tq, nine_c), jnp.float32),   # running numerator acc
        ],
        compiler_params=pltpu.CompilerParams(
            dimension_semantics=("parallel", "parallel", "arbitrary"),
            vmem_limit_bytes=_VMEM_LIMIT),
    )(q, wn, raw)


# ---------------------------------------------------------------------------
# Kernel 4: conv_transpose2d(stride=1, padding=1) fold (/4) + residual.
# Nine pltpu.roll shifts on the flat HW axis; row/col masks hoisted.
# TODO(synk): tile over HW with one-row halos for very large images.
# ---------------------------------------------------------------------------
def _fold_residual_kernel(fused_ref, res_ref, o_ref, *, H, W, C):
    HW = H * W
    f32 = jnp.float32
    fused = fused_ref[...]                                   # (HW, 9C) f32
    idx = lax.broadcasted_iota(jnp.int32, (HW, 1), 0)
    row = idx // W
    col = idx % W
    # out[p] += fused_tap[p - s]; source position = p - (dy*W + dx)
    row_ge1 = row >= 1            # needed when dy == +1
    row_le = row <= H - 2         # needed when dy == -1
    col_ge1 = col >= 1            # needed when dx == +1
    col_le = col <= W - 2         # needed when dx == -1

    acc = jnp.zeros((HW, C), f32)
    for i in range(KSIZE):
        for j in range(KSIZE):
            t = i * KSIZE + j
            dy, dx = i - 1, j - 1
            s = dy * W + dx
            a = fused[:, t * C:(t + 1) * C]                  # (HW, C) tap slice
            if s != 0:
                a = pltpu.roll(a, shift=s % HW, axis=0)      # a[p] <- fused_tap[p - s]
            mask = None
            if dy == 1:
                mask = row_ge1
            elif dy == -1:
                mask = row_le
            if dx == 1:
                mask = col_ge1 if mask is None else jnp.logical_and(mask, col_ge1)
            elif dx == -1:
                mask = col_le if mask is None else jnp.logical_and(mask, col_le)
            if mask is not None:
                a = jnp.where(mask, a, 0.0)
            acc = acc + a
    o_ref[...] = acc * 0.25 + res_ref[...] * RES_SCALE


def _fold_residual(fused, res_flat, H, W, C):
    B, HW, nine_c = fused.shape
    return pl.pallas_call(
        functools.partial(_fold_residual_kernel, H=H, W=W, C=C),
        grid=(B,),
        in_specs=[pl.BlockSpec((None, HW, nine_c), lambda b: (b, 0, 0)),
                  pl.BlockSpec((None, HW, C), lambda b: (b, 0, 0))],
        out_specs=pl.BlockSpec((None, HW, C), lambda b: (b, 0, 0)),
        out_shape=jax.ShapeDtypeStruct((B, HW, C), jnp.float32),
        compiler_params=pltpu.CompilerParams(
            dimension_semantics=("parallel",), vmem_limit_bytes=_VMEM_LIMIT),
    )(fused, res_flat)


# ---------------------------------------------------------------------------
# Forward pass
# ---------------------------------------------------------------------------
def pyramid_attention_forward(params, x, small, *, q_tile=256, l_tile=512):
    """x: (B, H, W, C) NHWC; small: (B, Hs, Ws, C) NHWC (level-2 pyramid ref)."""
    B, H, W, C = x.shape
    Bs, Hs, Ws, _ = small.shape
    CR = C // REDUCTION
    HW = H * W
    HWs = Hs * Ws

    # Fused BasicBlocks on `input`: [conv_match_L_base | conv_match | conv_assembly]
    w_x = jnp.concatenate(
        [params["w_match_base"], params["w_match"], params["w_assembly"]], axis=1)
    b_x = jnp.concatenate(
        [params["b_match_base"], params["b_match"], params["b_assembly"]])
    feat_x = pointwise_conv_prelu(x.reshape(-1, C), w_x, b_x).reshape(B, HW, -1)
    match_base = feat_x[..., :CR]
    match_x = feat_x[..., CR:2 * CR]
    asm_x = feat_x[..., 2 * CR:]

    # Fused BasicBlocks on `small`: [conv_match | conv_assembly]
    w_s = jnp.concatenate([params["w_match"], params["w_assembly"]], axis=1)
    b_s = jnp.concatenate([params["b_match"], params["b_assembly"]])
    feat_s = pointwise_conv_prelu(small.reshape(-1, C), w_s, b_s).reshape(Bs, HWs, -1)
    match_s = feat_s[..., :CR]
    asm_s = feat_s[..., CR:]

    # In-kernel 3x3 patch extraction; keys are prenormalized (L2 clamp) with
    # softmax_scale folded in, everything streamed to attention as bf16.
    q_patches = patchify(match_base, H, W)                                # (B, HW, K)
    wn_x = patchify(match_x, H, W, normalize=True, scale=SOFTMAX_SCALE)   # (B, HW, K)
    raw_x = patchify(asm_x, H, W)                                         # (B, HW, 9C)
    wn_s = patchify(match_s, Hs, Ws, normalize=True, scale=SOFTMAX_SCALE) # (B, HWs, K)
    raw_s = patchify(asm_s, Hs, Ws)                                       # (B, HWs, 9C)

    # pyramid levels: scale 1.0 -> input, scale 0.9 -> caller-supplied `small`
    wn_all = jnp.concatenate([wn_x, wn_s], axis=1)                        # (B, L, K)
    raw_all = jnp.concatenate([raw_x, raw_s], axis=1)                     # (B, L, 9C)

    fused = _flash_attention(q_patches, wn_all, raw_all,
                             q_tile=q_tile, l_tile=l_tile)                # (B, HW, 9C)
    out = _fold_residual(fused, x.reshape(B, HW, C), H, W, C)             # (B, HW, C)
    return out.reshape(B, H, W, C)


# ---------------------------------------------------------------------------
# Independent pure-JAX reference (XLA convs, all f32) for validation
# ---------------------------------------------------------------------------
def reference_forward(params, x, small):
    B, H, W, C = x.shape

    def pw(xx, w, b):
        y = jnp.einsum("bhwc,cd->bhwd", xx, w) + b
        return jnp.where(y >= 0, y, PRELU_ALPHA * y)

    def patches(xx):
        Bq, Hs, Ws, Cc = xx.shape
        xp = jnp.pad(xx, ((0, 0), (1, 1), (1, 1), (0, 0)))
        t = jnp.stack([xp[:, i:i + Hs, j:j + Ws, :]
                       for i in range(3) for j in range(3)], axis=-1)
        return t.reshape(Bq, Hs * Ws, Cc, 3, 3)               # (B, L, Cc, kh, kw)

    match_base = pw(x, params["w_match_base"], params["b_match_base"])
    w_list, raw_list = [], []
    for lvl in range(LEVEL):
        ref = x if lvl == 0 else small
        raw_list.append(patches(pw(ref, params["w_assembly"], params["b_assembly"])))
        w_list.append(patches(pw(ref, params["w_match"], params["b_match"])))
    wi_all = jnp.concatenate(w_list, axis=1)
    raw_all = jnp.concatenate(raw_list, axis=1)

    outs = []
    for b in range(B):
        wi = wi_all[b]                                        # (L, CR, 3, 3)
        norm = jnp.maximum(
            jnp.sqrt(jnp.sum(wi ** 2, axis=(1, 2, 3), keepdims=True)), ESCAPE_NAN)
        wn = wi / norm
        filt = jnp.transpose(wn, (2, 3, 1, 0))                # HWIO
        scores = lax.conv_general_dilated(
            match_base[b:b + 1], filt, (1, 1), "SAME",
            dimension_numbers=("NHWC", "HWIO", "NHWC"))
        probs = jax.nn.softmax(scores * SOFTMAX_SCALE, axis=-1)
        raw = raw_all[b]                                      # (L, C, 3, 3)
        filt2 = jnp.transpose(raw[:, :, ::-1, ::-1], (2, 3, 0, 1))   # flip -> HWIO
        yi = lax.conv_general_dilated(
            probs, filt2, (1, 1), "SAME",
            dimension_numbers=("NHWC", "HWIO", "NHWC")) / 4.0
        outs.append(yi[0])
    return jnp.stack(outs, axis=0) + x * RES_SCALE


if __name__ == "__main__":
    B, H, W = 2, 8, 8
    Hs, Ws = 4, 4
    C = CHANNEL
    CR = C // REDUCTION

    key = jax.random.PRNGKey(0)
    ks = jax.random.split(key, 8)
    x = jax.random.normal(ks[0], (B, H, W, C), jnp.float32)          # "input"
    small = jax.random.normal(ks[1], (B, Hs, Ws, C), jnp.float32)    # "small"

    params = {
        "w_match_base": 0.1 * jax.random.normal(ks[2], (C, CR), jnp.float32),
        "b_match_base": 0.01 * jax.random.normal(ks[3], (CR,), jnp.float32),
        "w_match": 0.1 * jax.random.normal(ks[4], (C, CR), jnp.float32),
        "b_match": 0.01 * jax.random.normal(ks[5], (CR,), jnp.float32),
        "w_assembly": 0.1 * jax.random.normal(ks[6], (C, C), jnp.float32),
        "b_assembly": 0.01 * jax.random.normal(ks[7], (C,), jnp.float32),
    }

    # Small tile sizes so the demo exercises the multi-tile flash path:
    # grid = (B=2, HW tiles=2, L tiles=2).
    out = pyramid_attention_forward(params, x, small, q_tile=32, l_tile=40)
    out = jax.block_until_ready(out)
    assert out.shape == (B, H, W, C) and out.dtype == jnp.float32

    ref = reference_forward(params, x, small)
    err = float(jnp.max(jnp.abs(out - ref)))
    # bf16 MXU operands with f32 accumulation; softmax_scale=10 amplifies the
    # bf16 logit rounding, hence a looser tolerance than pure-f32.
    assert err < 1e-2, f"max abs error vs f32 reference: {err}"

    print("KERNEL_OK")
</pallas_src>

<mosaic_0001>
module attributes {stable_mosaic.version = 11 : i64} {
  func.func @_pw_conv_prelu_kernel(%arg0: i32, %arg1: memref<128x16xf32, #tpu.memory_space<vmem>>, %arg2: memref<16x24xf32, #tpu.memory_space<vmem>>, %arg3: memref<1x24xf32, #tpu.memory_space<vmem>>, %arg4: memref<128x24xf32, #tpu.memory_space<vmem>>) attributes {dimension_semantics = [#tpu.dimension_semantics<parallel>], iteration_bounds = array<i64: 1>, scalar_prefetch = 0 : i64, scratch_operands = 0 : i64, tpu.core_type = #tpu.core_type<tc>, window_params = [{transform_indices = @transform_0, window_bounds = array<i64: 128, 16>}, {pipeline_mode = #tpu.pipeline_mode<synchronous>, transform_indices = @transform_1, window_bounds = array<i64: 16, 24>}, {pipeline_mode = #tpu.pipeline_mode<synchronous>, transform_indices = @transform_2, window_bounds = array<i64: 1, 24>}, {transform_indices = @transform_3, window_bounds = array<i64: 128, 24>}]} {
    %c0 = arith.constant 0 : index
    %c0_0 = arith.constant 0 : index
    %0 = vector.load %arg1[%c0, %c0_0] : memref<128x16xf32, #tpu.memory_space<vmem>>, vector<128x16xf32>
    %c0_1 = arith.constant 0 : index
    %c0_2 = arith.constant 0 : index
    %1 = vector.load %arg2[%c0_1, %c0_2] : memref<16x24xf32, #tpu.memory_space<vmem>>, vector<16x24xf32>
    %cst = arith.constant dense<0.000000e+00> : vector<128x24xf32>
    %2 = tpu.matmul %0, %1, %cst {dimension_numbers = #tpu.dot_dimension_numbers<[1], [0], [0], [1], [0, 0, 1, 1], [], []>} : vector<128x16xf32>, vector<16x24xf32>, vector<128x24xf32> -> vector<128x24xf32>
    %c0_3 = arith.constant 0 : index
    %c0_4 = arith.constant 0 : index
    %3 = vector.load %arg3[%c0_3, %c0_4] : memref<1x24xf32, #tpu.memory_space<vmem>>, vector<1x24xf32>
    %4 = vector.broadcast %3 : vector<1x24xf32> to vector<128x24xf32>
    %5 = arith.addf %2, %4 : vector<128x24xf32>
    %cst_5 = arith.constant 0.000000e+00 : f32
    %6 = vector.broadcast %cst_5 : f32 to vector<128x24xf32>
    %7 = arith.cmpf oge, %5, %6 : vector<128x24xf32>
    %cst_6 = arith.constant 2.500000e-01 : f32
    %8 = vector.broadcast %cst_6 : f32 to vector<128x24xf32>
    %9 = arith.mulf %8, %5 : vector<128x24xf32>
    %10 = arith.select %7, %5, %9 : vector<128x24xi1>, vector<128x24xf32>
    %c0_7 = arith.constant 0 : index
    %c0_8 = arith.constant 0 : index
    %11 = vector.load %arg4[%c0_7, %c0_8] : memref<128x24xf32, #tpu.memory_space<vmem>>, vector<128x24xf32>
    tpu.vector_store %arg4[%c0_7, %c0_8], %10 {strides = array<i32>} : memref<128x24xf32, #tpu.memory_space<vmem>>, vector<128x24xf32>,
    return
  }
  func.func @transform_0(%arg0: i32) -> (i32, i32) {
    %c0_i32 = arith.constant 0 : i32
    %c0_i32_0 = arith.constant 0 : i32
    return %arg0, %c0_i32 : i32, i32
  }
  func.func @transform_1(%arg0: i32) -> (i32, i32) {
    %c0_i32 = arith.constant 0 : i32
    %c0_i32_0 = arith.constant 0 : i32
    %c0_i32_1 = arith.constant 0 : i32
    return %c0_i32, %c0_i32_0 : i32, i32
  }
  func.func @transform_2(%arg0: i32) -> (i32, i32) {
    %c0_i32 = arith.constant 0 : i32
    %c0_i32_0 = arith.constant 0 : i32
    %c0_i32_1 = arith.constant 0 : i32
    return %c0_i32, %c0_i32_0 : i32, i32
  }
  func.func @transform_3(%arg0: i32) -> (i32, i32) {
    %c0_i32 = arith.constant 0 : i32
    %c0_i32_0 = arith.constant 0 : i32
    return %arg0, %c0_i32 : i32, i32
  }
}

</mosaic_0001>

<bundles_post_ra>
// kernel: tpu_custom_call.1
= control target key start
LH: loop header
LB: loop body
LE: loop exit
PB: predicated region body
PF: predicated region fallthrough
CT: control target
= control target key end

     0   :  { %vm36_vm0 = vcmask 130048   ;;  %vm198_vm1 = vcmask 195584   ;;  %s417_s1 = inlined_call_operand.vmem [shape: f32[16,24], index: 1, kind: input, shape index: {}]   ;;  %s418_s0 = inlined_call_operand.vmem [shape: f32[128,16], index: 0, kind: input, shape index: {}]   ;;  %s419_s2 = inlined_call_operand.vmem [shape: f32[1,24], index: 2, kind: input, shape index: {}]   ;;  %s420_s3 = inlined_call_operand.vmem [shape: f32[128,24], index: 3, kind: output, shape index: {}]  }
   0x1   :  { %v31_v0 = vld [vmem:[%s417_s1 + $0x8] sm:$0xff]  ;;  %v30_v1 = vld [vmem:[%s417_s1] sm:$0xff]  ;;  %v24_v10 = vld [vmem:[%s418_s0 + $0x50] sm:$0xff] }
   0x2   :  { %236 = vmatpush.msra.mxu2 %v31_v0  ;;  %237 = vmatpush.msra.mxu3 %v31_v0  ;;  %v22_v2 = vld [vmem:[%s418_s0 + $0x40] sm:$0xff]  ;;  %v23_v6 = vld [vmem:[%s418_s0 + $0x48] sm:$0xff]  ;;  %v28_v11 = vld [vmem:[%s418_s0 + $0x70] sm:$0xff] }
   0x3   :  { %v26_v3 = vld [vmem:[%s418_s0 + $0x60] sm:$0xff]  ;;  %99 = vmatpush.msra.mxu0 %v31_v0  ;;  %235 = vmatpush.msra.mxu1 %v31_v0  ;;  %v27_v7 = vld [vmem:[%s418_s0 + $0x68] sm:$0xff]  ;;  %v16_v12 = vld [vmem:[%s418_s0 + $0x10] sm:$0xff] }
   0x4   :  { %239 = vmatpush.msra.mxu2 %v30_v1  ;;  %240 = vmatpush.msra.mxu3 %v30_v1  ;;  %v14_v4 = vld [vmem:[%s418_s0] sm:$0xff]  ;;  %v15_v8 = vld [vmem:[%s418_s0 + $0x8] sm:$0xff]  ;;  %v20_v13 = vld [vmem:[%s418_s0 + $0x30] sm:$0xff] }
   0x5   :  { %v18_v5 = vld [vmem:[%s418_s0 + $0x20] sm:$0xff]  ;;  %227 = vmatmul.msk.f32.vlgmr.msra.gmra.mxu2 %vm36_vm0, %v22_v2  ;;  %231 = vmatmul.msk.f32.vlgmr.msra.gmra.mxu3 %vm36_vm0, %v26_v3  ;;  %v19_v9 = vld [vmem:[%s418_s0 + $0x28] sm:$0xff]  ;;  %v25_v14 = vld [vmem:[%s418_s0 + $0x58] sm:$0xff] }
   0x6   :  { %100 = vmatpush.msra.mxu0 %v30_v1  ;;  %238 = vmatpush.msra.mxu1 %v30_v1  ;;  %v29_v15 = vld [vmem:[%s418_s0 + $0x78] sm:$0xff]  ;;  %v335_v18 = vld [vmem:[%s419_s2] ss:$0 sm:$0xff] }
   0x7   :  { %219 = vmatmul.msk.f32.vlgmr.msra.gmra.mxu0 %vm36_vm0, %v14_v4  ;;  %223 = vmatmul.msk.f32.vlgmr.msra.gmra.mxu1 %vm36_vm0, %v18_v5  ;;  %v17_v16 = vld [vmem:[%s418_s0 + $0x18] sm:$0xff] }
   0x8   :  { %v21_v17 = vld [vmem:[%s418_s0 + $0x38] sm:$0xff] }
   0xd   :  { %228 = vmatmul.msk.f32.gmra.mxu2 %vm36_vm0, %v23_v6  ;;  %232 = vmatmul.msk.f32.gmra.mxu3 %vm36_vm0, %v27_v7 }
   0xf   :  { %220 = vmatmul.msk.f32.gmra.mxu0 %vm36_vm0, %v15_v8  ;;  %224 = vmatmul.msk.f32.gmra.mxu1 %vm36_vm0, %v19_v9 }
  0x15   :  { %229 = vmatmul.msk.f32.gmra.mxu2 %vm36_vm0, %v24_v10  ;;  %233 = vmatmul.msk.f32.gmra.mxu3 %vm36_vm0, %v28_v11 }
  0x17   :  { %221 = vmatmul.msk.f32.gmra.mxu0 %vm36_vm0, %v16_v12  ;;  %225 = vmatmul.msk.f32.gmra.mxu1 %vm36_vm0, %v20_v13 }
  0x1d   :  { %230 = vmatmul.msk.f32.gmra.mxu2 %vm36_vm0, %v25_v14  ;;  %234 = vmatmul.msk.f32.gmra.mxu3 %vm36_vm0, %v29_v15 }
  0x1f   :  { %222 = vmatmul.msk.f32.gmra.mxu0 %vm36_vm0, %v17_v16  ;;  %226 = vmatmul.msk.f32.gmra.mxu1 %vm36_vm0, %v21_v17 }
  0x84   :  { %v102_v19 = vpop.f32.mrf.mxu0  ;;  %v114_v20 = vpop.f32.mrf.mxu1 }
  0x85   :  { %v103_v21 = vadd.f32 %v335_v18, %v102_v19  ;;  %v115_v22 = vadd.f32 %v335_v18, %v114_v20 }
  0x87   :  { %vm150_vm2 = vcmp.ge.f32.partialorder %v103_v21, 0.0  ;;  %v166_v23 = vmul.f32 0.25, %v103_v21  ;;  %vm154_vm3 = vcmp.ge.f32.partialorder %v115_v22, 0.0  ;;  %v170_v24 = vmul.f32 0.25, %v115_v22 }
  0x88   :  { %v126_v25 = vpop.f32.mrf.mxu2  ;;  %v138_v26 = vpop.f32.mrf.mxu3 }
  0x89   :  { %v182_v27 = vsel %vm150_vm2, %v103_v21, %v166_v23  ;;  %v186_v28 = vsel %vm154_vm3, %v115_v22, %v170_v24  ;;  %v127_v29 = vadd.f32 %v335_v18, %v126_v25  ;;  %v139_v30 = vadd.f32 %v335_v18, %v138_v26 }
  0x8a   :  { %199 = vst.msk [vmem:[%s420_s3] sm:$0xff] %vm198_vm1, %v182_v27 }
  0x8b   :  { %203 = vst.msk [vmem:[%s420_s3 + $0x20] sm:$0xff] %vm198_vm1, %v186_v28  ;;  %vm158_vm4 = vcmp.ge.f32.partialorder %v127_v29, 0.0  ;;  %v174_v31 = vmul.f32 0.25, %v127_v29  ;;  %vm162_vm5 = vcmp.ge.f32.partialorder %v139_v30, 0.0  ;;  %v178_v32 = vmul.f32 0.25, %v139_v30 }
  0x8c   :  { %v105_v33 = vpop.f32.mrf.mxu0  ;;  %v117_v34 = vpop.f32.mrf.mxu1 }
  0x8d   :  { %v190_v35 = vsel %vm158_vm4, %v127_v29, %v174_v31  ;;  %v194_v36 = vsel %vm162_vm5, %v139_v30, %v178_v32  ;;  %v106_v37 = vadd.f32 %v335_v18, %v105_v33  ;;  %v118_v38 = vadd.f32 %v335_v18, %v117_v34 }
  0x8e   :  { %207 = vst.msk [vmem:[%s420_s3 + $0x40] sm:$0xff] %vm198_vm1, %v190_v35 }
  0x8f   :  { %211 = vst.msk [vmem:[%s420_s3 + $0x60] sm:$0xff] %vm198_vm1, %v194_v36  ;;  %vm151_vm6 = vcmp.ge.f32.partialorder %v106_v37, 0.0  ;;  %v167_v39 = vmul.f32 0.25, %v106_v37  ;;  %vm155_vm7 = vcmp.ge.f32.partialorder %v118_v38, 0.0  ;;  %v171_v40 = vmul.f32 0.25, %v118_v38 }
  0x90   :  { %v129_v41 = vpop.f32.mrf.mxu2  ;;  %v141_v42 = vpop.f32.mrf.mxu3 }
  0x91   :  { %v183_v43 = vsel %vm151_vm6, %v106_v37, %v167_v39  ;;  %v187_v44 = vsel %vm155_vm7, %v118_v38, %v171_v40  ;;  %v130_v45 = vadd.f32 %v335_v18, %v129_v41  ;;  %v142_v46 = vadd.f32 %v335_v18, %v141_v42 }
  0x92   :  { %200 = vst.msk [vmem:[%s420_s3 + $0x8] sm:$0xff] %vm198_vm1, %v183_v43 }
  0x93   :  { %204 = vst.msk [vmem:[%s420_s3 + $0x28] sm:$0xff] %vm198_vm1, %v187_v44  ;;  %vm159_vm8 = vcmp.ge.f32.partialorder %v130_v45, 0.0  ;;  %v175_v47 = vmul.f32 0.25, %v130_v45  ;;  %vm163_vm9 = vcmp.ge.f32.partialorder %v142_v46, 0.0  ;;  %v179_v48 = vmul.f32 0.25, %v142_v46 }
  0x94   :  { %v108_v49 = vpop.f32.mrf.mxu0  ;;  %v120_v50 = vpop.f32.mrf.mxu1 }
  0x95   :  { %v191_v51 = vsel %vm159_vm8, %v130_v45, %v175_v47  ;;  %v195_v52 = vsel %vm163_vm9, %v142_v46, %v179_v48  ;;  %v109_v53 = vadd.f32 %v335_v18, %v108_v49  ;;  %v121_v54 = vadd.f32 %v335_v18, %v120_v50 }
  0x96   :  { %208 = vst.msk [vmem:[%s420_s3 + $0x48] sm:$0xff] %vm198_vm1, %v191_v51 }
  0x97   :  { %212 = vst.msk [vmem:[%s420_s3 + $0x68] sm:$0xff] %vm198_vm1, %v195_v52  ;;  %vm152_vm10 = vcmp.ge.f32.partialorder %v109_v53, 0.0  ;;  %v168_v55 = vmul.f32 0.25, %v109_v53  ;;  %vm156_vm11 = vcmp.ge.f32.partialorder %v121_v54, 0.0  ;;  %v172_v56 = vmul.f32 0.25, %v121_v54 }
  0x98   :  { %v132_v57 = vpop.f32.mrf.mxu2  ;;  %v144_v58 = vpop.f32.mrf.mxu3 }
  0x99   :  { %v184_v59 = vsel %vm152_vm10, %v109_v53, %v168_v55  ;;  %v188_v60 = vsel %vm156_vm11, %v121_v54, %v172_v56  ;;  %v133_v61 = vadd.f32 %v335_v18, %v132_v57  ;;  %v145_v62 = vadd.f32 %v335_v18, %v144_v58 }
  0x9a   :  { %201 = vst.msk [vmem:[%s420_s3 + $0x10] sm:$0xff] %vm198_vm1, %v184_v59 }
  0x9b   :  { %205 = vst.msk [vmem:[%s420_s3 + $0x30] sm:$0xff] %vm198_vm1, %v188_v60  ;;  %vm160_vm12 = vcmp.ge.f32.partialorder %v133_v61, 0.0  ;;  %v176_v63 = vmul.f32 0.25, %v133_v61  ;;  %vm164_vm13 = vcmp.ge.f32.partialorder %v145_v62, 0.0  ;;  %v180_v0 = vmul.f32 0.25, %v145_v62 }
  0x9c   :  { %v111_v1 = vpop.f32.mrf.mxu0  ;;  %v123_v2 = vpop.f32.mrf.mxu1 }
  0x9d   :  { %v192_v3 = vsel %vm160_vm12, %v133_v61, %v176_v63  ;;  %v196_v4 = vsel %vm164_vm13, %v145_v62, %v180_v0  ;;  %v112_v5 = vadd.f32 %v335_v18, %v111_v1  ;;  %v124_v6 = vadd.f32 %v335_v18, %v123_v2 }
  0x9e   :  { %209 = vst.msk [vmem:[%s420_s3 + $0x50] sm:$0xff] %vm198_vm1, %v192_v3 }
  0x9f   :  { %213 = vst.msk [vmem:[%s420_s3 + $0x70] sm:$0xff] %vm198_vm1, %v196_v4  ;;  %vm153_vm14 = vcmp.ge.f32.partialorder %v112_v5, 0.0  ;;  %v169_v7 = vmul.f32 0.25, %v112_v5  ;;  %vm157_vm15 = vcmp.ge.f32.partialorder %v124_v6, 0.0  ;;  %v173_v8 = vmul.f32 0.25, %v124_v6 }
  0xa0   :  { %v135_v9 = vpop.f32.mrf.mxu2  ;;  %v147_v10 = vpop.f32.mrf.mxu3 }
  0xa1   :  { %v185_v11 = vsel %vm153_vm14, %v112_v5, %v169_v7  ;;  %v189_v12 = vsel %vm157_vm15, %v124_v6, %v173_v8  ;;  %v136_v13 = vadd.f32 %v335_v18, %v135_v9  ;;  %v148_v14 = vadd.f32 %v335_v18, %v147_v10 }
  0xa2   :  { %202 = vst.msk [vmem:[%s420_s3 + $0x18] sm:$0xff] %vm198_vm1, %v185_v11 }
  0xa3   :  { %206 = vst.msk [vmem:[%s420_s3 + $0x38] sm:$0xff] %vm198_vm1, %v189_v12  ;;  %vm161_vm0 = vcmp.ge.f32.partialorder %v136_v13, 0.0  ;;  %v177_v15 = vmul.f32 0.25, %v136_v13  ;;  %vm165_vm2 = vcmp.ge.f32.partialorder %v148_v14, 0.0  ;;  %v181_v16 = vmul.f32 0.25, %v148_v14 }
  0xa5   :  { %v193_v17 = vsel %vm161_vm0, %v136_v13, %v177_v15  ;;  %v197_v19 = vsel %vm165_vm2, %v148_v14, %v181_v16 }
  0xa6   :  { %210 = vst.msk [vmem:[%s420_s3 + $0x58] sm:$0xff] %vm198_vm1, %v193_v17 }
  0xa7   :  { %214 = vst.msk [vmem:[%s420_s3 + $0x78] sm:$0xff] %vm198_vm1, %v197_v19 }

</bundles_post_ra>
